<compile_context>
chip_gen: v6e
topology: v6e:2x2x1
jax: 0.10.0
libtpu: 0.0.40
codegen_flags: <defaults>
</compile_context>

<pallas_src>
import functools

import jax
import jax.numpy as jnp
from jax.experimental import pallas as pl
from jax.experimental.pallas import tpu as pltpu


def _round_up(n, m):
    return ((n + m - 1) // m) * m


def _cdiv(a, b):
    return (a + b - 1) // b


def _choose_tile(batch, tile_cap):
    """Near-equal batch tiles: multiple of 16, >=2 grid steps when batch allows
    (so both v7x TensorCores get work), padding waste < 16 rows per tile."""
    tile_cap = max(16, _round_up(tile_cap, 16))
    n_steps = max(_cdiv(batch, tile_cap), 2)
    tile = min(_round_up(_cdiv(batch, n_steps), 16), tile_cap)
    n_steps = _cdiv(batch, tile)
    return tile, n_steps * tile


def qnet_kernel(x_ref, w1_ref, b1_ref, w2_ref, b2_ref, w3_ref, b3_ref, o_ref):
    # x_ref: [TILE_B, obs_dim] bf16; weights bf16; biases f32; o_ref: [TILE_B, A] f32.
    x = x_ref[...]
    # Layer 1: MXU matmul (bf16 in, f32 acc) + f32 bias-add + ReLU on the VPU.
    h1 = jnp.dot(x, w1_ref[...], preferred_element_type=jnp.float32) + b1_ref[...]
    h1 = jnp.maximum(h1, 0.0)
    # Layer 2 (hidden2 zero-padded to 128 -> full-lane result / elementwise path).
    h2 = jnp.dot(h1.astype(jnp.bfloat16), w2_ref[...],
                 preferred_element_type=jnp.float32) + b2_ref[...]
    h2 = jnp.maximum(h2, 0.0)
    # Layer 3: narrow N = action_dim (full-last-dim block; masked vst is trivial
    # next to avoiding 64x padded writeback).
    out = jnp.dot(h2.astype(jnp.bfloat16), w3_ref[...],
                  preferred_element_type=jnp.float32) + b3_ref[...]
    o_ref[...] = out.astype(o_ref.dtype)


@functools.partial(jax.jit, static_argnames=("tile_b",))
def qnetwork_forward(x, params, *, tile_b=1024):
    """x: [B, obs_dim] float32; params: dict of w1,b1,w2,b2,w3,b3 (f32, [in,out]/[1,out])."""
    B, obs_dim = x.shape
    hidden1 = params["w1"].shape[1]              # 128
    hidden2 = params["w2"].shape[1]              # 64
    action_dim = params["w3"].shape[1]
    h2_pad = _round_up(hidden2, 128)             # pad hidden2 64 -> 128 (full-lane)

    # bf16 MXU operands; biases stay f32 (elementwise math happens on the f32 acc).
    w1 = params["w1"].astype(jnp.bfloat16)                                    # (obs, 128)
    b1 = params["b1"].astype(jnp.float32)                                     # (1, 128)
    w2 = jnp.zeros((hidden1, h2_pad), jnp.bfloat16).at[:, :hidden2].set(
        params["w2"].astype(jnp.bfloat16))                                    # (128, 128)
    b2 = jnp.zeros((1, h2_pad), jnp.float32).at[:, :hidden2].set(
        params["b2"].astype(jnp.float32))                                     # (1, 128)
    w3 = jnp.zeros((h2_pad, action_dim), jnp.bfloat16).at[:hidden2].set(
        params["w3"].astype(jnp.bfloat16))                                    # (128, A)
    b3 = params["b3"].astype(jnp.float32)                                     # (1, A)

    # Near-equal batch tiles (multiple of 16, >=2 grid steps when possible).
    tile, b_pad = _choose_tile(B, tile_b)
    x_p = jnp.zeros((b_pad, obs_dim), jnp.bfloat16).at[:B].set(x.astype(jnp.bfloat16))
    grid = (b_pad // tile,)

    # Weights/biases: constant index map, single-buffered (resident in VMEM).
    resident = lambda a: pl.BlockSpec(a.shape, lambda i: (0,) * a.ndim,
                                      pipeline_mode=pl.Buffered(1))

    out = pl.pallas_call(
        qnet_kernel,
        out_shape=jax.ShapeDtypeStruct((b_pad, action_dim), jnp.float32),
        grid=grid,
        in_specs=[
            pl.BlockSpec((tile, obs_dim), lambda i: (i, 0)),   # x: tiled over batch
            resident(w1), resident(b1),
            resident(w2), resident(b2),
            resident(w3), resident(b3),
        ],
        out_specs=pl.BlockSpec((tile, action_dim), lambda i: (i, 0)),
        compiler_params=pltpu.CompilerParams(
            dimension_semantics=("parallel",),      # shards batch tiles across v7x's 2 TCs
            vmem_limit_bytes=32 * 1024 * 1024,      # explicit: v5e default is 16 MiB
        ),
    )(x_p, w1, b1, w2, b2, w3, b3)

    return out[:B]                                  # drop only padded batch rows


def init_params(key, obs_dim, action_dim):
    """Deterministic init mimicking PyTorch nn.Linear default (U[-1/sqrt(fan_in), +...])."""
    dims = [(obs_dim, 128), (128, 64), (64, action_dim)]
    params = {}
    for i, (fan_in, fan_out) in enumerate(dims, start=1):
        key, kw, kb = jax.random.split(key, 3)
        bound = 1.0 / (fan_in ** 0.5)
        params[f"w{i}"] = jax.random.uniform(
            kw, (fan_in, fan_out), jnp.float32, -bound, bound)
        params[f"b{i}"] = jax.random.uniform(
            kb, (1, fan_out), jnp.float32, -bound, bound)
    return params


if __name__ == "__main__":
    key = jax.random.PRNGKey(0)
    obs_dim, action_dim, batch = 4, 2, 200   # CartPole-sized Q-network

    kx, kp = jax.random.split(key)
    x = jax.random.normal(kx, (batch, obs_dim), dtype=jnp.float32)
    params = init_params(kp, obs_dim, action_dim)

    # Pure-JAX f32 reference (loose tol: kernel uses bf16 MXU operands).
    h1 = jnp.maximum(x @ params["w1"] + params["b1"], 0.0)
    h2 = jnp.maximum(h1 @ params["w2"] + params["b2"], 0.0)
    ref = h2 @ params["w3"] + params["b3"]

    # Default cap -> 2 grid steps (tile 112, pad to 224); cap 64 -> 4 grid steps.
    for tb in (1024, 64):
        out = jax.block_until_ready(qnetwork_forward(x, params, tile_b=tb))
        assert out.shape == (batch, action_dim)
        err = float(jnp.max(jnp.abs(out - ref)))
        assert jnp.allclose(out, ref, atol=2e-2, rtol=2e-2), f"tile_b={tb} max abs err {err}"

    print("KERNEL_OK")
</pallas_src>

<mosaic_0001>
module attributes {stable_mosaic.version = 11 : i64} {
  func.func @qnet_kernel(%arg0: i32, %arg1: memref<112x4xbf16, #tpu.memory_space<vmem>>, %arg2: memref<4x128xbf16, #tpu.memory_space<vmem>>, %arg3: memref<1x128xf32, #tpu.memory_space<vmem>>, %arg4: memref<128x128xbf16, #tpu.memory_space<vmem>>, %arg5: memref<1x128xf32, #tpu.memory_space<vmem>>, %arg6: memref<128x2xbf16, #tpu.memory_space<vmem>>, %arg7: memref<1x2xf32, #tpu.memory_space<vmem>>, %arg8: memref<112x2xf32, #tpu.memory_space<vmem>>) attributes {dimension_semantics = [#tpu.dimension_semantics<parallel>], iteration_bounds = array<i64: 2>, scalar_prefetch = 0 : i64, scratch_operands = 0 : i64, tpu.core_type = #tpu.core_type<tc>, window_params = [{transform_indices = @transform_0, window_bounds = array<i64: 112, 4>}, {pipeline_mode = #tpu.pipeline_mode<synchronous>, transform_indices = @transform_1, window_bounds = array<i64: 4, 128>}, {pipeline_mode = #tpu.pipeline_mode<synchronous>, transform_indices = @transform_2, window_bounds = array<i64: 1, 128>}, {pipeline_mode = #tpu.pipeline_mode<synchronous>, transform_indices = @transform_3, window_bounds = array<i64: 128, 128>}, {pipeline_mode = #tpu.pipeline_mode<synchronous>, transform_indices = @transform_4, window_bounds = array<i64: 1, 128>}, {pipeline_mode = #tpu.pipeline_mode<synchronous>, transform_indices = @transform_5, window_bounds = array<i64: 128, 2>}, {pipeline_mode = #tpu.pipeline_mode<synchronous>, transform_indices = @transform_6, window_bounds = array<i64: 1, 2>}, {transform_indices = @transform_7, window_bounds = array<i64: 112, 2>}]} {
    %c0 = arith.constant 0 : index
    %c0_0 = arith.constant 0 : index
    %0 = vector.load %arg1[%c0, %c0_0] : memref<112x4xbf16, #tpu.memory_space<vmem>>, vector<112x4xbf16>
    %c0_1 = arith.constant 0 : index
    %c0_2 = arith.constant 0 : index
    %1 = vector.load %arg2[%c0_1, %c0_2] : memref<4x128xbf16, #tpu.memory_space<vmem>>, vector<4x128xbf16>
    %cst = arith.constant dense<0.000000e+00> : vector<112x128xf32>
    %2 = tpu.matmul %0, %1, %cst {dimension_numbers = #tpu.dot_dimension_numbers<[1], [0], [0], [1], [0, 0, 1, 1], [], []>} : vector<112x4xbf16>, vector<4x128xbf16>, vector<112x128xf32> -> vector<112x128xf32>
    %c0_3 = arith.constant 0 : index
    %c0_4 = arith.constant 0 : index
    %3 = vector.load %arg3[%c0_3, %c0_4] : memref<1x128xf32, #tpu.memory_space<vmem>>, vector<1x128xf32>
    %4 = vector.broadcast %3 : vector<1x128xf32> to vector<112x128xf32>
    %5 = arith.addf %2, %4 : vector<112x128xf32>
    %cst_5 = arith.constant 0.000000e+00 : f32
    %6 = vector.broadcast %cst_5 : f32 to vector<112x128xf32>
    %7 = arith.maximumf %5, %6 : vector<112x128xf32>
    %8 = arith.truncf %7 : vector<112x128xf32> to vector<112x128xbf16>
    %c0_6 = arith.constant 0 : index
    %c0_7 = arith.constant 0 : index
    %9 = vector.load %arg4[%c0_6, %c0_7] : memref<128x128xbf16, #tpu.memory_space<vmem>>, vector<128x128xbf16>
    %cst_8 = arith.constant dense<0.000000e+00> : vector<112x128xf32>
    %10 = tpu.matmul %8, %9, %cst_8 {dimension_numbers = #tpu.dot_dimension_numbers<[1], [0], [0], [1], [0, 0, 1, 1], [], []>} : vector<112x128xbf16>, vector<128x128xbf16>, vector<112x128xf32> -> vector<112x128xf32>
    %c0_9 = arith.constant 0 : index
    %c0_10 = arith.constant 0 : index
    %11 = vector.load %arg5[%c0_9, %c0_10] : memref<1x128xf32, #tpu.memory_space<vmem>>, vector<1x128xf32>
    %12 = vector.broadcast %11 : vector<1x128xf32> to vector<112x128xf32>
    %13 = arith.addf %10, %12 : vector<112x128xf32>
    %cst_11 = arith.constant 0.000000e+00 : f32
    %14 = vector.broadcast %cst_11 : f32 to vector<112x128xf32>
    %15 = arith.maximumf %13, %14 : vector<112x128xf32>
    %16 = arith.truncf %15 : vector<112x128xf32> to vector<112x128xbf16>
    %c0_12 = arith.constant 0 : index
    %c0_13 = arith.constant 0 : index
    %17 = vector.load %arg6[%c0_12, %c0_13] : memref<128x2xbf16, #tpu.memory_space<vmem>>, vector<128x2xbf16>
    %cst_14 = arith.constant dense<0.000000e+00> : vector<112x2xf32>
    %18 = tpu.matmul %16, %17, %cst_14 {dimension_numbers = #tpu.dot_dimension_numbers<[1], [0], [0], [1], [0, 0, 1, 1], [], []>} : vector<112x128xbf16>, vector<128x2xbf16>, vector<112x2xf32> -> vector<112x2xf32>
    %c0_15 = arith.constant 0 : index
    %c0_16 = arith.constant 0 : index
    %19 = vector.load %arg7[%c0_15, %c0_16] : memref<1x2xf32, #tpu.memory_space<vmem>>, vector<1x2xf32>
    %20 = vector.broadcast %19 : vector<1x2xf32> to vector<112x2xf32>
    %21 = arith.addf %18, %20 : vector<112x2xf32>
    %c0_17 = arith.constant 0 : index
    %c0_18 = arith.constant 0 : index
    %22 = vector.load %arg8[%c0_17, %c0_18] : memref<112x2xf32, #tpu.memory_space<vmem>>, vector<112x2xf32>
    tpu.vector_store %arg8[%c0_17, %c0_18], %21 {strides = array<i32>} : memref<112x2xf32, #tpu.memory_space<vmem>>, vector<112x2xf32>,
    return
  }
  func.func @transform_0(%arg0: i32) -> (i32, i32) {
    %c0_i32 = arith.constant 0 : i32
    %c0_i32_0 = arith.constant 0 : i32
    return %arg0, %c0_i32 : i32, i32
  }
  func.func @transform_1(%arg0: i32) -> (i32, i32) {
    %c0_i32 = arith.constant 0 : i32
    %c0_i32_0 = arith.constant 0 : i32
    %c0_i32_1 = arith.constant 0 : i32
    return %c0_i32, %c0_i32_0 : i32, i32
  }
  func.func @transform_2(%arg0: i32) -> (i32, i32) {
    %c0_i32 = arith.constant 0 : i32
    %c0_i32_0 = arith.constant 0 : i32
    %c0_i32_1 = arith.constant 0 : i32
    return %c0_i32, %c0_i32_0 : i32, i32
  }
  func.func @transform_3(%arg0: i32) -> (i32, i32) {
    %c0_i32 = arith.constant 0 : i32
    %c0_i32_0 = arith.constant 0 : i32
    %c0_i32_1 = arith.constant 0 : i32
    return %c0_i32, %c0_i32_0 : i32, i32
  }
  func.func @transform_4(%arg0: i32) -> (i32, i32) {
    %c0_i32 = arith.constant 0 : i32
    %c0_i32_0 = arith.constant 0 : i32
    %c0_i32_1 = arith.constant 0 : i32
    return %c0_i32, %c0_i32_0 : i32, i32
  }
  func.func @transform_5(%arg0: i32) -> (i32, i32) {
    %c0_i32 = arith.constant 0 : i32
    %c0_i32_0 = arith.constant 0 : i32
    %c0_i32_1 = arith.constant 0 : i32
    return %c0_i32, %c0_i32_0 : i32, i32
  }
  func.func @transform_6(%arg0: i32) -> (i32, i32) {
    %c0_i32 = arith.constant 0 : i32
    %c0_i32_0 = arith.constant 0 : i32
    %c0_i32_1 = arith.constant 0 : i32
    return %c0_i32, %c0_i32_0 : i32, i32
  }
  func.func @transform_7(%arg0: i32) -> (i32, i32) {
    %c0_i32 = arith.constant 0 : i32
    %c0_i32_0 = arith.constant 0 : i32
    return %arg0, %c0_i32 : i32, i32
  }
}

</mosaic_0001>

<bundles_post_ra>
// kernel: qnetwork_forward.1
= control target key start
LH: loop header
LB: loop body
LE: loop exit
PB: predicated region body
PF: predicated region fallthrough
CT: control target
= control target key end

     0   :  { %s1171_s24 = smov 0   ;;  %s1381_s0 = inlined_call_operand.vmem [shape: bf16[224,4], index: 0, kind: input, shape index: {}]   ;;  %s1382_s1 = inlined_call_operand.vmem [shape: bf16[4,128], index: 1, kind: input, shape index: {}]   ;;  %s1383_s2 = inlined_call_operand.vmem [shape: f32[1,128], index: 2, kind: input, shape index: {}]   ;;  %s1384_s3 = inlined_call_operand.vmem [shape: bf16[128,128], index: 3, kind: input, shape index: {}]   ;;  %s1385_s4 = inlined_call_operand.vmem [shape: f32[1,128], index: 4, kind: input, shape index: {}]   ;;  %s1386_s5 = inlined_call_operand.vmem [shape: bf16[128,2], index: 5, kind: input, shape index: {}]   ;;  %s1387_s6 = inlined_call_operand.vmem [shape: f32[1,2], index: 6, kind: input, shape index: {}]   ;;  %s1388_s7 = inlined_call_operand.vmem [shape: f32[224,2], index: 7, kind: output, shape index: {}]  }
   0x1 LB: > { %s888_s25 = sadd.s32 4294967295, %s1127_s24   ;;  %p892_p0 = scmp.ge.s32.totalorder %s1127_s24, 1  ;;  %s1127_s24 = sphi %s1171_s24, %s17_s24  }
   0x2   : > { %p238_p1 = scmp.lt.s32.totalorder %s1127_s24, 3 }
   0x4   : > { %p239_p2 = pnand %p892_p0, %p238_p1 }
   0x5   : > { %s270_s28 = smul.u32 (!%p239_p2), 14, %s888_s25 }
   0x6   : > { %242 = sbr.rel (%p239_p2) target bundleno = 670 (0x29e), region = 48 }
   0x7   : > { %p271_p3 = scmp.lt.s32.totalorder (!%p239_p2), %s270_s28, 27 }
   0xb   : > { %v297_v0 = vld [vmem:[%s1382_s1] sm:$0x3]  ;;  %vm362_vm0 = vcmask 1041408   ;;  %v1129_v1 = vmov 0.0   ;;  %vm1130_vm1 = vmmov 0   ;;  %s1390_s28 = smov (!%p271_p3, %s270_s28), 27 }
   0xc   : > { %968 = vmatprep.subr.bf16.mxu0 %v1129_v1  ;;  %v364_v2 = vsel %vm362_vm0, %v297_v0, 0  ;;  %970 = vmatprep.mubr.msk.bf16.mxu0 %vm1130_vm1, %v1129_v1  ;;  %s893_s29 = sshll.u32 %s1390_s28, 2  ;;  %vm340_vm2 = vcmask 31744   ;;  %v1105_v4 = vld [vmem:[%s1384_s3 + $0x38] sm:$0xff]   ;;  %v1106_v6 = vld [vmem:[%s1384_s3 + $0x30] sm:$0xff]   ;;  %v1107_v9 = vld [vmem:[%s1384_s3 + $0x28] sm:$0xff]  }
   0xd   : > { %969 = vmatpush3.bf16.msra.mxu0 %v364_v2  ;;  %1086 = vmatprep.subr.bf16.mxu1 %v1129_v1  ;;  %s274_s9 = scalar_lea.vmem %s1381_s0, %s893_s29  ;;  %v1108_v11 = vld [vmem:[%s1384_s3 + $0x20] sm:$0xff]   ;;  %v1109_v13 = vld [vmem:[%s1384_s3 + $0x18] sm:$0xff]   ;;  %v1110_v15 = vld [vmem:[%s1384_s3 + $0x10] sm:$0xff]   ;;  %s894_s26 = sshll.u32 %s1390_s28, 3  ;;  %vm817_vm3 = vcmask 15360  }
   0xe   : > { %1087 = vmatpush3.bf16.msra.mxu1 %v364_v2  ;;  %986 = vmatprep.mubr.msk.bf16.mxu1 %vm1130_vm1, %v1129_v1  ;;  %v1098_v3 = vld [vmem:[%s274_s9] sm:$0xff]   ;;  %v1099_v7 = vld [vmem:[%s274_s9 + $0x8] sm:$0xff]   ;;  %v1100_v10 = vld [vmem:[%s274_s9 + $0x10] sm:$0xff]  }
   0xf   : > { %998 = vmatprep.subr.bf16.mxu1 %v1129_v1  ;;  %1042 = vmatprep.subr.bf16.mxu0 %v1129_v1  ;;  %v1102_v5 = vld [vmem:[%s274_s9 + $0x20] sm:$0xff]   ;;  %v1103_v8 = vld [vmem:[%s274_s9 + $0x28] sm:$0xff]   ;;  %v1104_v12 = vld [vmem:[%s274_s9 + $0x30] sm:$0xff]  }
  0x10   : > { %971 = vmatmul.mubr.msk.bf16.vlgmr.msra.gmra.mxu0 %vm340_vm2, %v1098_v3  ;;  %v1101_v14 = vld [vmem:[%s274_s9 + $0x18] sm:$0xff]   ;;  %v1111_v16 = vld [vmem:[%s1384_s3 + $0x8] sm:$0xff]   ;;  %v1112_v17 = vld [vmem:[%s1384_s3] sm:$0xff]   ;;  %s1348_s9 = scalar_lea.vmem %s1388_s7, %s894_s26 }
  0x11   : > { %974 = vmatprep.mubr.msk.bf16.mxu0 %vm1130_vm1, %v1129_v1  ;;  %987 = vmatmul.mubr.msk.bf16.vlgmr.msra.gmra.mxu1 %vm340_vm2, %v1102_v5  ;;  %v1113_v18 = vld [vmem:[%s1386_s5 + $0x38] sm:$0xff]   ;;  %v1114_v19 = vld [vmem:[%s1386_s5 + $0x30] sm:$0xff]   ;;  %v1115_v20 = vld [vmem:[%s1386_s5 + $0x28] sm:$0xff]  }
  0x12   : > { %990 = vmatprep.mubr.msk.bf16.mxu1 %vm1130_vm1, %v1129_v1  ;;  %999 = vmatpush3.bf16.msra.mxu1 %v1105_v4  ;;  %v1116_v21 = vld [vmem:[%s1386_s5 + $0x20] sm:$0xff]   ;;  %v1117_v22 = vld [vmem:[%s1386_s5 + $0x18] sm:$0xff]   ;;  %v1118_v23 = vld [vmem:[%s1386_s5 + $0x10] sm:$0xff]  }
  0x13   : > { %1000 = vmatprep.subr.bf16.mxu1 %v1129_v1  ;;  %1043 = vmatpush3.bf16.msra.mxu0 %v1113_v18  ;;  %v1275_v24 = vld [vmem:[%s1383_s2] ss:$0 sm:$0xff] }
  0x14   : > { %1044 = vmatprep.subr.bf16.mxu0 %v1129_v1 }
  0x16   : > { %1001 = vmatpush3.bf16.msra.mxu1 %v1106_v6 }
  0x17   : > { %1002 = vmatprep.subr.bf16.mxu1 %v1129_v1  ;;  %1045 = vmatpush3.bf16.msra.mxu0 %v1114_v19 }
  0x18   : > { %975 = vmatmul.mubr.msk.bf16.gmra.mxu0 %vm340_vm2, %v1099_v7  ;;  %1046 = vmatprep.subr.bf16.mxu0 %v1129_v1 }
  0x19   : > { %978 = vmatprep.mubr.msk.bf16.mxu0 %vm1130_vm1, %v1129_v1  ;;  %991 = vmatmul.mubr.msk.bf16.gmra.mxu1 %vm340_vm2, %v1103_v8 }
  0x1a   : > { %994 = vmatprep.mubr.msk.bf16.mxu1 %vm1130_vm1, %v1129_v1  ;;  %1003 = vmatpush3.bf16.msra.mxu1 %v1107_v9 }
  0x1b   : > { %1004 = vmatprep.subr.bf16.mxu1 %v1129_v1  ;;  %1047 = vmatpush3.bf16.msra.mxu0 %v1115_v20 }
  0x1c   : > { %1048 = vmatprep.subr.bf16.mxu0 %v1129_v1 }
  0x1e   : > { %1005 = vmatpush3.bf16.msra.mxu1 %v1108_v11 }
  0x1f   : > { %1006 = vmatprep.subr.bf16.mxu1 %v1129_v1  ;;  %1049 = vmatpush3.bf16.msra.mxu0 %v1116_v21 }
  0x20   : > { %979 = vmatmul.mubr.msk.bf16.gmra.mxu0 %vm340_vm2, %v1100_v10  ;;  %1050 = vmatprep.subr.bf16.mxu0 %v1129_v1 }
  0x21   : > { %982 = vmatprep.mubr.msk.bf16.mxu0 %vm1130_vm1, %v1129_v1  ;;  %995 = vmatmul.mubr.msk.bf16.gmra.mxu1 %vm340_vm2, %v1104_v12 }
  0x22   : > { %1007 = vmatpush3.bf16.msra.mxu1 %v1109_v13  ;;  %1014 = vmatprep.mubr.msk.bf16.mxu1 %vm1130_vm1, %v1129_v1 }
  0x23   : > { %1008 = vmatprep.subr.bf16.mxu1 %v1129_v1  ;;  %1051 = vmatpush3.bf16.msra.mxu0 %v1117_v22 }
  0x24   : > { %1052 = vmatprep.subr.bf16.mxu0 %v1129_v1 }
  0x26   : > { %1009 = vmatpush3.bf16.msra.mxu1 %v1110_v15 }
  0x27   : > { %1010 = vmatprep.subr.bf16.mxu1 %v1129_v1  ;;  %1053 = vmatpush3.bf16.msra.mxu0 %v1118_v23 }
  0x28   : > { %983 = vmatmul.mubr.msk.bf16.gmra.mxu0 %vm340_vm2, %v1101_v14  ;;  %1054 = vmatprep.subr.bf16.mxu0 %v1129_v1 }
  0x29   : > { %1058 = vmatprep.mubr.msk.bf16.mxu0 %vm1130_vm1, %v1129_v1 }
  0x2a   : > { %1011 = vmatpush3.bf16.msra.mxu1 %v1111_v16 }
  0x2b   : > { %1012 = vmatprep.subr.bf16.mxu1 %v1129_v1 }
  0x2e   : > { %1013 = vmatpush3.bf16.msra.mxu1 %v1112_v17 }
  0xd0   : > { %v400_v25 = vpop.f32.mrf.mxu0 }
  0xd1   : > { %v401_v27 = vadd.f32 %v1275_v24, %v400_v25  ;;  %v432_v29 = vpop.f32.mrf.mxu1 }
  0xd2   : > { %v972_v26 = vpop.f32.mrf.mxu0  ;;  %v433_v9 = vadd.f32 %v1275_v24, %v432_v29 }
  0xd3   : > { %v988_v32 = vpop.f32.mrf.mxu1  ;;  %v455_v33 = vmax.f32 %v401_v27, 0.0  ;;  %v1119_v26 = vld [vmem:[%s1386_s5 + $0x8] sm:$0xff]   ;;  %v1120_v27 = vld [vmem:[%s1386_s5] sm:$0xff]  }
  0xd4   : > { %v403_v28 = vpop.f32.mrf.mxu0  ;;  %v463_v12 = vmax.f32 %v433_v9, 0.0  ;;  %1055 = vmatpush3.bf16.msra.mxu0 %v1119_v26 }
  0xd5   : > { %v404_v30 = vadd.f32 %v1275_v24, %v403_v28  ;;  %v435_v36 = vpop.f32.mrf.mxu1  ;;  %1056 = vmatprep.subr.bf16.mxu0 %v1129_v1 }
  0xd6   : > { %v973_v31 = vpop.f32.mrf.mxu0  ;;  %v436_v11 = vadd.f32 %v1275_v24, %v435_v36 }
  0xd7   : > { %v456_v34 = vmax.f32 %v404_v30, 0.0  ;;  %v989_v39 = vpop.f32.mrf.mxu1 }
  0xd8   : > { %v408_v35 = vpop.f32.mrf.mxu0  ;;  %v464_v13 = vmax.f32 %v436_v11, 0.0  ;;  %1057 = vmatpush3.bf16.msra.mxu0 %v1120_v27 }
  0xd9   : > { %v469_v37 = vpack.c.bf16 %v456_v34, %v455_v33  ;;  %v409_v40 = vadd.f32 %v1275_v24, %v408_v35  ;;  %v440_v42 = vpop.f32.mrf.mxu1 }
  0xda   : > { %v976_v38 = vpop.f32.mrf.mxu0  ;;  %v473_v14 = vpack.c.bf16 %v464_v13, %v463_v12  ;;  %v441_v15 = vadd.f32 %v1275_v24, %v440_v42 }
  0xdb   : > { %1015 = vmatmul.mubr.bf16.vlgmr.msra.gmra.mxu1 %v469_v37  ;;  %v992_v45 = vpop.f32.mrf.mxu1  ;;  %v457_v46 = vmax.f32 %v409_v40, 0.0 }
  0xdc   : > { %v411_v41 = vpop.f32.mrf.mxu0  ;;  %1018 = vmatprep.mubr.msk.bf16.mxu1 %vm1130_vm1, %v1129_v1  ;;  %v465_v17 = vmax.f32 %v441_v15, 0.0 }
  0xdd   : > { %v412_v43 = vadd.f32 %v1275_v24, %v411_v41  ;;  %v443_v49 = vpop.f32.mrf.mxu1 }
  0xde   : > { %v977_v44 = vpop.f32.mrf.mxu0  ;;  %v444_v16 = vadd.f32 %v1275_v24, %v443_v49 }
  0xdf   : > { %v458_v47 = vmax.f32 %v412_v43, 0.0  ;;  %v993_v52 = vpop.f32.mrf.mxu1 }
  0xe0   : > { %v416_v48 = vpop.f32.mrf.mxu0  ;;  %v466_v18 = vmax.f32 %v444_v16, 0.0 }
  0xe1   : > { %v470_v50 = vpack.c.bf16 %v458_v47, %v457_v46  ;;  %v417_v53 = vadd.f32 %v1275_v24, %v416_v48  ;;  %v448_v55 = vpop.f32.mrf.mxu1 }
  0xe2   : > { %v980_v51 = vpop.f32.mrf.mxu0  ;;  %v474_v19 = vpack.c.bf16 %v466_v18, %v465_v17  ;;  %v449_v20 = vadd.f32 %v1275_v24, %v448_v55 }
  0xe3   : > { %1019 = vmatmul.mubr.bf16.gmra.mxu1 %v470_v50  ;;  %v996_v58 = vpop.f32.mrf.mxu1  ;;  %v459_v59 = vmax.f32 %v417_v53, 0.0 }
  0xe4   : > { %v419_v54 = vpop.f32.mrf.mxu0  ;;  %1022 = vmatprep.mubr.msk.bf16.mxu1 %vm1130_vm1, %v1129_v1  ;;  %v467_v22 = vmax.f32 %v449_v20, 0.0 }
  0xe5   : > { %v420_v56 = vadd.f32 %v1275_v24, %v419_v54  ;;  %v451_v62 = vpop.f32.mrf.mxu1 }
  0xe6   : > { %v981_v57 = vpop.f32.mrf.mxu0  ;;  %v452_v21 = vadd.f32 %v1275_v24, %v451_v62 }
  0xe7   : > { %v460_v60 = vmax.f32 %v420_v56, 0.0  ;;  %v997_v2 = vpop.f32.mrf.mxu1 }
  0xe8   : > { %v424_v61 = vpop.f32.mrf.mxu0  ;;  %v468_v23 = vmax.f32 %v452_v21, 0.0 }
  0xe9   : > { %v471_v63 = vpack.c.bf16 %v460_v60, %v459_v59  ;;  %v425_v3 = vadd.f32 %v1275_v24, %v424_v61 }
  0xea   : > { %v984_v0 = vpop.f32.mrf.mxu0  ;;  %v475_v25 = vpack.c.bf16 %v468_v23, %v467_v22 }
  0xeb   : > { %1023 = vmatmul.mubr.bf16.gmra.mxu1 %v471_v63  ;;  %v461_v7 = vmax.f32 %v425_v3, 0.0 }
  0xec   : > { %v427_v4 = vpop.f32.mrf.mxu0  ;;  %1026 = vmatprep.mubr.msk.bf16.mxu1 %vm1130_vm1, %v1129_v1 }
  0xed   : > { %v428_v5 = vadd.f32 %v1275_v24, %v427_v4  ;;  %v1313_v24 = vld [vmem:[%s1385_s4] ss:$0 sm:$0xff] }
  0xee   : > { %v985_v6 = vpop.f32.mrf.mxu0 }
  0xef   : > { %v462_v8 = vmax.f32 %v428_v5, 0.0 }
  0xf1   : > { %v472_v10 = vpack.c.bf16 %v462_v8, %v461_v7 }
  0xf3   : > { %1027 = vmatmul.mubr.bf16.gmra.mxu1 %v472_v10 }
  0xf4   : > { %1030 = vmatprep.mubr.msk.bf16.mxu1 %vm1130_vm1, %v1129_v1 }
  0xfb   : > { %1031 = vmatmul.mubr.bf16.gmra.mxu1 %v473_v14 }
  0xfc   : > { %1034 = vmatprep.mubr.msk.bf16.mxu1 %vm1130_vm1, %v1129_v1 }
 0x103   : > { %1035 = vmatmul.mubr.bf16.gmra.mxu1 %v474_v19 }
 0x104   : > { %1038 = vmatprep.mubr.msk.bf16.mxu1 %vm1130_vm1, %v1129_v1 }
 0x10b   : > { %1039 = vmatmul.mubr.bf16.gmra.mxu1 %v475_v25 }
 0x19b   : > { %v581_v28 = vpop.f32.mrf.mxu1 }
 0x19c   : > { %v582_v30 = vadd.f32 %v1313_v24, %v581_v28 }
 0x19d   : > { %v1016_v29 = vpop.f32.mrf.mxu1 }
 0x19e   : > { %v636_v34 = vmax.f32 %v582_v30, 0.0  ;;  %v919_v29 = vld [vmem:[%s1387_s6] ss:$0 sm:$0xff] }
 0x19f   : > { %v584_v31 = vpop.f32.mrf.mxu1 }
 0x1a0   : > { %v585_v32 = vadd.f32 %v1313_v24, %v584_v31 }
 0x1a1   : > { %v1017_v33 = vpop.f32.mrf.mxu1 }
 0x1a2   : > { %v637_v35 = vmax.f32 %v585_v32, 0.0 }
 0x1a3   : > { %v589_v36 = vpop.f32.mrf.mxu1 }
 0x1a4   : > { %v650_v37 = vpack.c.bf16 %v637_v35, %v636_v34  ;;  %v590_v39 = vadd.f32 %v1313_v24, %v589_v36 }
 0x1a5   : > { %v1020_v38 = vpop.f32.mrf.mxu1 }
 0x1a6   : > { %1059 = vmatmul.mubr.bf16.vlgmr.msra.gmra.mxu0 %v650_v37  ;;  %v638_v43 = vmax.f32 %v590_v39, 0.0 }
 0x1a7   : > { %v592_v40 = vpop.f32.mrf.mxu1  ;;  %1062 = vmatprep.mubr.msk.bf16.mxu0 %vm1130_vm1, %v1129_v1 }
 0x1a8   : > { %v593_v41 = vadd.f32 %v1313_v24, %v592_v40 }
 0x1a9   : > { %v1021_v42 = vpop.f32.mrf.mxu1 }
 0x1aa   : > { %v639_v44 = vmax.f32 %v593_v41, 0.0 }
 0x1ab   : > { %v597_v45 = vpop.f32.mrf.mxu1 }
 0x1ac   : > { %v651_v46 = vpack.c.bf16 %v639_v44, %v638_v43  ;;  %v598_v48 = vadd.f32 %v1313_v24, %v597_v45 }
 0x1ad   : > { %v1024_v47 = vpop.f32.mrf.mxu1 }
 0x1ae   : > { %1063 = vmatmul.mubr.bf16.gmra.mxu0 %v651_v46  ;;  %v640_v52 = vmax.f32 %v598_v48, 0.0 }
 0x1af   : > { %v600_v49 = vpop.f32.mrf.mxu1  ;;  %1066 = vmatprep.mubr.msk.bf16.mxu0 %vm1130_vm1, %v1129_v1 }
 0x1b0   : > { %v601_v50 = vadd.f32 %v1313_v24, %v600_v49 }
 0x1b1   : > { %v1025_v51 = vpop.f32.mrf.mxu1 }
 0x1b2   : > { %v641_v53 = vmax.f32 %v601_v50, 0.0 }
 0x1b3   : > { %v605_v54 = vpop.f32.mrf.mxu1 }
 0x1b4   : > { %v652_v55 = vpack.c.bf16 %v641_v53, %v640_v52  ;;  %v606_v57 = vadd.f32 %v1313_v24, %v605_v54 }
 0x1b5   : > { %v1028_v56 = vpop.f32.mrf.mxu1 }
 0x1b6   : > { %1067 = vmatmul.mubr.bf16.gmra.mxu0 %v652_v55  ;;  %v642_v61 = vmax.f32 %v606_v57, 0.0 }
 0x1b7   : > { %v608_v58 = vpop.f32.mrf.mxu1  ;;  %1070 = vmatprep.mubr.msk.bf16.mxu0 %vm1130_vm1, %v1129_v1 }
 0x1b8   : > { %v609_v59 = vadd.f32 %v1313_v24, %v608_v58 }
 0x1b9   : > { %v1029_v60 = vpop.f32.mrf.mxu1 }
 0x1ba   : > { %v643_v62 = vmax.f32 %v609_v59, 0.0 }
 0x1bb   : > { %v613_v63 = vpop.f32.mrf.mxu1 }
 0x1bc   : > { %v653_v0 = vpack.c.bf16 %v643_v62, %v642_v61  ;;  %v614_v3 = vadd.f32 %v1313_v24, %v613_v63 }
 0x1bd   : > { %v1032_v2 = vpop.f32.mrf.mxu1 }
 0x1be   : > { %1071 = vmatmul.mubr.bf16.gmra.mxu0 %v653_v0  ;;  %v644_v7 = vmax.f32 %v614_v3, 0.0 }
 0x1bf   : > { %v616_v4 = vpop.f32.mrf.mxu1  ;;  %1074 = vmatprep.mubr.msk.bf16.mxu0 %vm1130_vm1, %v1129_v1 }
 0x1c0   : > { %v617_v5 = vadd.f32 %v1313_v24, %v616_v4 }
 0x1c1   : > { %v1033_v6 = vpop.f32.mrf.mxu1 }
 0x1c2   : > { %v645_v8 = vmax.f32 %v617_v5, 0.0 }
 0x1c3   : > { %v621_v9 = vpop.f32.mrf.mxu1 }
 0x1c4   : > { %v654_v10 = vpack.c.bf16 %v645_v8, %v644_v7  ;;  %v622_v12 = vadd.f32 %v1313_v24, %v621_v9 }
 0x1c5   : > { %v1036_v11 = vpop.f32.mrf.mxu1 }
 0x1c6   : > { %1075 = vmatmul.mubr.bf16.gmra.mxu0 %v654_v10  ;;  %v646_v16 = vmax.f32 %v622_v12, 0.0 }
 0x1c7   : > { %v624_v13 = vpop.f32.mrf.mxu1  ;;  %1078 = vmatprep.mubr.msk.bf16.mxu0 %vm1130_vm1, %v1129_v1 }
 0x1c8   : > { %v625_v14 = vadd.f32 %v1313_v24, %v624_v13 }
 0x1c9   : > { %v1037_v15 = vpop.f32.mrf.mxu1 }
 0x1ca   : > { %v647_v17 = vmax.f32 %v625_v14, 0.0 }
 0x1cb   : > { %v629_v18 = vpop.f32.mrf.mxu1 }
 0x1cc   : > { %v655_v19 = vpack.c.bf16 %v647_v17, %v646_v16  ;;  %v630_v21 = vadd.f32 %v1313_v24, %v629_v18 }
 0x1cd   : > { %v1040_v20 = vpop.f32.mrf.mxu1 }
 0x1ce   : > { %1079 = vmatmul.mubr.bf16.gmra.mxu0 %v655_v19  ;;  %v648_v26 = vmax.f32 %v630_v21, 0.0 }
 0x1cf   : > { %v632_v22 = vpop.f32.mrf.mxu1  ;;  %1082 = vmatprep.mubr.msk.bf16.mxu0 %vm1130_vm1, %v1129_v1 }
 0x1d0   : > { %v633_v23 = vadd.f32 %v1313_v24, %v632_v22 }
 0x1d1   : > { %v1041_v25 = vpop.f32.mrf.mxu1 }
 0x1d2   : > { %v649_v27 = vmax.f32 %v633_v23, 0.0 }
 0x1d4   : > { %v656_v28 = vpack.c.bf16 %v649_v27, %v648_v26 }
 0x1d6   : > { %1083 = vmatmul.mubr.bf16.gmra.mxu0 %v656_v28 }
 0x266   : > { %v762_v1 = vpop.f32.mrf.mxu0 }
 0x267   : > { %v763_v24 = vadd.f32 %v919_v29, %v762_v1 }
 0x268   : > { %v1060_v30 = vpop.f32.mrf.mxu0 }
 0x269   : > { %818 = vst.msk [vmem:[%s1348_s9] sm:$0xff] %vm817_vm3, %v763_v24 }
 0x26a   : > { %v765_v31 = vpop.f32.mrf.mxu0 }
 0x26b   : > { %v766_v32 = vadd.f32 %v919_v29, %v765_v31 }
 0x26c   : > { %v1061_v33 = vpop.f32.mrf.mxu0 }
 0x26d   : > { %819 = vst.msk [vmem:[%s1348_s9 + $0x8] sm:$0xff] %vm817_vm3, %v766_v32 }
 0x26e   : > { %v770_v34 = vpop.f32.mrf.mxu0 }
 0x26f   : > { %v771_v35 = vadd.f32 %v919_v29, %v770_v34 }
 0x270   : > { %v1064_v36 = vpop.f32.mrf.mxu0 }
 0x271   : > { %820 = vst.msk [vmem:[%s1348_s9 + $0x10] sm:$0xff] %vm817_vm3, %v771_v35 }
 0x272   : > { %v773_v37 = vpop.f32.mrf.mxu0 }
 0x273   : > { %v774_v38 = vadd.f32 %v919_v29, %v773_v37 }
 0x274   : > { %v1065_v39 = vpop.f32.mrf.mxu0 }
 0x275   : > { %821 = vst.msk [vmem:[%s1348_s9 + $0x18] sm:$0xff] %vm817_vm3, %v774_v38 }
 0x276   : > { %v778_v40 = vpop.f32.mrf.mxu0 }
 0x277   : > { %v779_v41 = vadd.f32 %v919_v29, %v778_v40 }
 0x278   : > { %v1068_v42 = vpop.f32.mrf.mxu0 }
 0x279   : > { %822 = vst.msk [vmem:[%s1348_s9 + $0x20] sm:$0xff] %vm817_vm3, %v779_v41 }
 0x27a   : > { %v781_v43 = vpop.f32.mrf.mxu0 }
 0x27b   : > { %v782_v44 = vadd.f32 %v919_v29, %v781_v43 }
 0x27c   : > { %v1069_v45 = vpop.f32.mrf.mxu0 }
 0x27d   : > { %823 = vst.msk [vmem:[%s1348_s9 + $0x28] sm:$0xff] %vm817_vm3, %v782_v44 }
 0x27e   : > { %v786_v46 = vpop.f32.mrf.mxu0 }
 0x27f   : > { %v787_v47 = vadd.f32 %v919_v29, %v786_v46 }
 0x280   : > { %v1072_v48 = vpop.f32.mrf.mxu0 }
 0x281   : > { %824 = vst.msk [vmem:[%s1348_s9 + $0x30] sm:$0xff] %vm817_vm3, %v787_v47 }
 0x282   : > { %v789_v49 = vpop.f32.mrf.mxu0 }
 0x283   : > { %v790_v50 = vadd.f32 %v919_v29, %v789_v49 }
 0x284   : > { %v1073_v51 = vpop.f32.mrf.mxu0 }
 0x285   : > { %825 = vst.msk [vmem:[%s1348_s9 + $0x38] sm:$0xff] %vm817_vm3, %v790_v50 }
 0x286   : > { %v794_v52 = vpop.f32.mrf.mxu0 }
 0x287   : > { %v795_v53 = vadd.f32 %v919_v29, %v794_v52 }
 0x288   : > { %v1076_v54 = vpop.f32.mrf.mxu0 }
 0x289   : > { %826 = vst.msk [vmem:[%s1348_s9 + $0x40] sm:$0xff] %vm817_vm3, %v795_v53 }
 0x28a   : > { %v797_v55 = vpop.f32.mrf.mxu0 }
 0x28b   : > { %v798_v56 = vadd.f32 %v919_v29, %v797_v55 }
 0x28c   : > { %v1077_v57 = vpop.f32.mrf.mxu0 }
 0x28d   : > { %827 = vst.msk [vmem:[%s1348_s9 + $0x48] sm:$0xff] %vm817_vm3, %v798_v56 }
 0x28e   : > { %v802_v58 = vpop.f32.mrf.mxu0 }
 0x28f   : > { %v803_v59 = vadd.f32 %v919_v29, %v802_v58 }
 0x290   : > { %v1080_v60 = vpop.f32.mrf.mxu0 }
 0x291   : > { %828 = vst.msk [vmem:[%s1348_s9 + $0x50] sm:$0xff] %vm817_vm3, %v803_v59 }
 0x292   : > { %v805_v61 = vpop.f32.mrf.mxu0 }
 0x293   : > { %v806_v62 = vadd.f32 %v919_v29, %v805_v61 }
 0x294   : > { %v1081_v63 = vpop.f32.mrf.mxu0 }
 0x295   : > { %829 = vst.msk [vmem:[%s1348_s9 + $0x58] sm:$0xff] %vm817_vm3, %v806_v62 }
 0x296   : > { %v810_v0 = vpop.f32.mrf.mxu0 }
 0x297   : > { %v811_v2 = vadd.f32 %v919_v29, %v810_v0 }
 0x298   : > { %v1084_v3 = vpop.f32.mrf.mxu0 }
 0x299   : > { %830 = vst.msk [vmem:[%s1348_s9 + $0x60] sm:$0xff] %vm817_vm3, %v811_v2 }
 0x29a   : > { %v813_v4 = vpop.f32.mrf.mxu0 }
 0x29b   : > { %v814_v5 = vadd.f32 %v919_v29, %v813_v4 }
 0x29c   : > { %v1085_v6 = vpop.f32.mrf.mxu0 }
 0x29d   : > { %831 = vst.msk [vmem:[%s1348_s9 + $0x68] sm:$0xff] %vm817_vm3, %v814_v5 }
 0x29e PF: > { %s17_s24 = sadd.s32 1, %s1127_s24  }
 0x29f   : > { %p14_p4 = scmp.ge.s32.totalorder %s17_s24, 4  }
 0x2a1   :  { %16 = sbr.rel (!%p14_p4) target bundleno = 1 (0x1), region = 78 }

</bundles_post_ra>
